<compile_context>
chip_gen: v7x
topology: tpu7x:2x2x1
jax: 0.10.0
libtpu: 0.0.40
codegen_flags: <defaults>
</compile_context>

<pallas_src>
import functools
import math

import jax
import jax.numpy as jnp
from jax.experimental import pallas as pl
from jax.experimental.pallas import tpu as pltpu


def _row_bad_mask(tgt, tile_n, n_rows, padding_idx):
    """(tile_n, 1) bool: row has padding target OR is out-of-bounds (ragged last tile)."""
    row0 = pl.program_id(0) * tile_n
    rows = jax.lax.broadcasted_iota(jnp.int32, (tile_n, 1), 0) + row0
    return (tgt == jnp.int32(padding_idx)) | (rows >= jnp.int32(n_rows))


def _ls_kernel_full(x_ref, tgt_ref, td_ref, part_ref, *, n_rows, padding_idx,
                    confidence, smooth_val, c1, c2):
    """Writes the smoothed distribution tile and a per-step scalar KL partial."""
    x = x_ref[...]                                   # (tile_n, V), input dtype
    tgt = tgt_ref[...]                               # (tile_n, 1) int32
    tn, v = x.shape
    dt = x.dtype

    cols = jax.lax.broadcasted_iota(jnp.int32, (tn, v), 1)
    is_tgt = cols == tgt                             # scatter_(1, target, confidence)
    row_bad = _row_bad_mask(tgt, tn, n_rows, padding_idx)
    zero = (cols == jnp.int32(padding_idx)) | row_bad

    td = jnp.where(zero, jnp.zeros((), dt),
                   jnp.where(is_tgt, jnp.asarray(confidence, dt),
                             jnp.asarray(smooth_val, dt)))
    td_ref[...] = td.astype(td_ref.dtype)

    # KLDivLoss(sum): td * (log(td) - x).  log(td) is a compile-time constant per
    # branch, so reuse the td / zero masks: kl = [is_tgt ? c1 : c2] - td*x, zeroed
    # (outer where) so garbage / -inf x in masked entries cannot leak NaNs.
    base = jnp.where(is_tgt, jnp.float32(c1), jnp.float32(c2))
    kl = jnp.where(zero, jnp.float32(0.0), base - (td * x).astype(jnp.float32))

    total = jnp.sum(jnp.sum(kl, axis=-1, keepdims=True), axis=0, keepdims=True)
    part_ref[...] = jnp.broadcast_to(total, part_ref.shape)   # lane-dense (8,128) store


def _ls_kernel_loss_only(x_ref, tgt_ref, part_ref, *, n_rows, padding_idx,
                         confidence, smooth_val, log_conf, log_smooth, v_size):
    """Analytic per-row KL (no true_dist materialization): ~2 reductions per row."""
    x32 = x_ref[...].astype(jnp.float32)             # (tile_n, V)
    tgt = tgt_ref[...]                                # (tile_n, 1) int32
    tn, v = x32.shape

    cols = jax.lax.broadcasted_iota(jnp.int32, (tn, v), 1)
    is_tgt = cols == tgt
    excl = is_tgt | (cols == jnp.int32(padding_idx))  # columns excluded from smooth sum
    row_bad = _row_bad_mask(tgt, tn, n_rows, padding_idx)

    x_tgt = jnp.sum(jnp.where(is_tgt, x32, jnp.float32(0.0)), axis=-1, keepdims=True)
    x_smooth = jnp.sum(jnp.where(excl, jnp.float32(0.0), x32), axis=-1, keepdims=True)

    row_kl = (jnp.float32(confidence) * (jnp.float32(log_conf) - x_tgt)
              + jnp.float32(smooth_val)
              * (jnp.float32((v_size - 2) * log_smooth) - x_smooth))
    row_kl = jnp.where(row_bad, jnp.float32(0.0), row_kl)

    total = jnp.sum(row_kl, axis=0, keepdims=True)
    part_ref[...] = jnp.broadcast_to(total, part_ref.shape)


def label_smoothing_loss(x, target, *, size, padding_idx, smoothing=0.0,
                         tile_n=None, return_true_dist=True, interpret=False):
    """Pallas implementation of LabelSmoothing.forward.

    Returns (loss, true_dist): loss is the scalar sum-reduced KLDivLoss
    (size_average=False); true_dist matches the tensor the PyTorch module stores
    (or None when return_true_dist=False).
    """
    n, v = x.shape
    assert v == size, "x.shape[1] must equal size"
    assert size > 2, "smoothing/(size-2) requires size > 2"

    confidence = 1.0 - smoothing
    smooth_val = smoothing / (size - 2)
    # Compile-time logs; when a branch value is 0 the product is 0 anyway.
    log_conf = math.log(confidence) if confidence > 0.0 else 0.0
    log_smooth = math.log(smooth_val) if smooth_val > 0.0 else 0.0

    x_bytes = jnp.dtype(x.dtype).itemsize
    td_bytes = x_bytes if return_true_dist else 0

    # Generation-aware VMEM budgeting (v7x has only 64 MiB/TC; v5e/v6e have 128 MiB).
    try:
        vmem_cap = int(getattr(pltpu.get_tpu_info(), "vmem_capacity_bytes", 64 << 20))
    except Exception:  # pragma: no cover - conservative fallback
        vmem_cap = 64 << 20

    # Per-element VMEM estimate: double-buffered x (+td) streams plus a few f32 temps.
    per_elem = 2 * x_bytes + 2 * td_bytes + 16
    if tile_n is None:
        budget = max(4 << 20, int(vmem_cap * 0.55) - (4 << 20))
        tile_n = budget // max(1, per_elem * v)
    tile_n = max(8, min(int(tile_n), 4096))
    tile_n = min(tile_n, max(8, ((n + 7) // 8) * 8))   # don't oversize tiny inputs
    tile_n = (tile_n // 8) * 8

    num_tiles = pl.cdiv(n, tile_n)
    tgt2d = target.astype(jnp.int32).reshape(n, 1)

    grid = (num_tiles,)
    x_spec = pl.BlockSpec((tile_n, v), lambda i: (i, 0))
    tgt_spec = pl.BlockSpec((tile_n, 1), lambda i: (i, 0))
    # Lane-dense per-step partial: one (8,128) tile per grid step holding the step's
    # scalar partial broadcast across the tile (unmasked vst, trivial HBM traffic).
    part_spec = pl.BlockSpec((8, 128), lambda i: (i, 0))
    part_shape = jax.ShapeDtypeStruct((num_tiles * 8, 128), jnp.float32)

    need = tile_n * v * per_elem + (4 << 20)
    vmem_limit = int(min(vmem_cap * 0.6, max(32 << 20, need)))
    cparams = pltpu.CompilerParams(dimension_semantics=("parallel",),
                                   vmem_limit_bytes=vmem_limit)

    consts = dict(n_rows=n, padding_idx=int(padding_idx),
                  confidence=float(confidence), smooth_val=float(smooth_val))

    if return_true_dist:
        kernel = functools.partial(_ls_kernel_full,
                                   c1=float(confidence * log_conf),
                                   c2=float(smooth_val * log_smooth), **consts)
        true_dist, part = pl.pallas_call(
            kernel,
            out_shape=(jax.ShapeDtypeStruct((n, v), x.dtype), part_shape),
            grid=grid,
            in_specs=[x_spec, tgt_spec],
            out_specs=(pl.BlockSpec((tile_n, v), lambda i: (i, 0)), part_spec),
            compiler_params=cparams,
            interpret=interpret,
        )(x, tgt2d)
    else:
        kernel = functools.partial(_ls_kernel_loss_only,
                                   log_conf=float(log_conf),
                                   log_smooth=float(log_smooth),
                                   v_size=int(v), **consts)
        part = pl.pallas_call(
            kernel,
            out_shape=part_shape,
            grid=grid,
            in_specs=[x_spec, tgt_spec],
            out_specs=part_spec,
            compiler_params=cparams,
            interpret=interpret,
        )(x, tgt2d)
        true_dist = None

    loss = jnp.sum(part[0::8, 0])   # one scalar per grid step
    return loss, true_dist


def _reference(x, target, *, size, padding_idx, smoothing):
    """Pure-JAX reference matching the PyTorch module semantics."""
    confidence = 1.0 - smoothing
    n, v = x.shape
    cols = jnp.arange(v, dtype=jnp.int32)[None, :]
    tgt = target.astype(jnp.int32)[:, None]
    td = jnp.where(cols == tgt, confidence, smoothing / (size - 2)).astype(jnp.float32)
    td = jnp.where(cols == padding_idx, 0.0, td)
    td = jnp.where(tgt == padding_idx, 0.0, td)
    kl = jnp.where(td > 0.0, td * (jnp.log(jnp.where(td > 0.0, td, 1.0)) - x), 0.0)
    return jnp.sum(kl), td


if __name__ == "__main__":
    SIZE = 16          # vocabulary / class count (x.size(1))
    PADDING_IDX = 0
    SMOOTHING = 0.1
    N = 8              # batch of flattened tokens

    key = jax.random.PRNGKey(0)
    kx, kt = jax.random.split(key)
    logits = jax.random.normal(kx, (N, SIZE), dtype=jnp.float32)
    x = jax.nn.log_softmax(logits, axis=-1)              # KLDivLoss expects log-probs
    target = jax.random.randint(kt, (N,), 0, SIZE, dtype=jnp.int32)
    target = target.at[3].set(PADDING_IDX)               # include a padded row

    loss, true_dist = label_smoothing_loss(
        x, target, size=SIZE, padding_idx=PADDING_IDX, smoothing=SMOOTHING)
    loss = jax.block_until_ready(loss)
    true_dist = jax.block_until_ready(true_dist)

    # Loss-only fast path (analytic rows, skips the true_dist HBM writeback).
    loss_only, _ = label_smoothing_loss(
        x, target, size=SIZE, padding_idx=PADDING_IDX, smoothing=SMOOTHING,
        return_true_dist=False)
    loss_only = jax.block_until_ready(loss_only)

    ref_loss, ref_td = _reference(
        x, target, size=SIZE, padding_idx=PADDING_IDX, smoothing=SMOOTHING)

    assert jnp.allclose(loss, ref_loss, atol=1e-5, rtol=1e-5), (loss, ref_loss)
    assert jnp.allclose(loss_only, ref_loss, atol=1e-5, rtol=1e-5), (loss_only, ref_loss)
    assert jnp.allclose(true_dist, ref_td, atol=1e-6)

    # Ragged-tile exercise: N not a multiple of tile_n, several grid steps.
    N2 = 83
    kx2, kt2 = jax.random.split(jax.random.PRNGKey(1))
    x2 = jax.nn.log_softmax(jax.random.normal(kx2, (N2, SIZE), jnp.float32), axis=-1)
    t2 = jax.random.randint(kt2, (N2,), 0, SIZE, dtype=jnp.int32)
    t2 = t2.at[7].set(PADDING_IDX)
    l2, td2 = label_smoothing_loss(x2, t2, size=SIZE, padding_idx=PADDING_IDX,
                                   smoothing=SMOOTHING, tile_n=16)
    l2o, _ = label_smoothing_loss(x2, t2, size=SIZE, padding_idx=PADDING_IDX,
                                  smoothing=SMOOTHING, tile_n=16,
                                  return_true_dist=False)
    rl2, rtd2 = _reference(x2, t2, size=SIZE, padding_idx=PADDING_IDX,
                           smoothing=SMOOTHING)
    assert jnp.allclose(jax.block_until_ready(l2), rl2, atol=1e-4, rtol=1e-5)
    assert jnp.allclose(jax.block_until_ready(l2o), rl2, atol=1e-4, rtol=1e-5)
    assert jnp.allclose(jax.block_until_ready(td2), rtd2, atol=1e-6)

    print("KERNEL_OK")
</pallas_src>

<mosaic_0001>
module attributes {stable_mosaic.version = 11 : i64} {
  func.func @_ls_kernel_full(%arg0: i32, %arg1: memref<8x16xf32, #tpu.memory_space<vmem>>, %arg2: memref<8x1xi32, #tpu.memory_space<vmem>>, %arg3: memref<8x16xf32, #tpu.memory_space<vmem>>, %arg4: memref<8x128xf32, #tpu.memory_space<vmem>>) attributes {dimension_semantics = [#tpu.dimension_semantics<parallel>], iteration_bounds = array<i64: 1>, scalar_prefetch = 0 : i64, scratch_operands = 0 : i64, tpu.core_type = #tpu.core_type<tc>, window_params = [{transform_indices = @transform_0, window_bounds = array<i64: 8, 16>}, {transform_indices = @transform_1, window_bounds = array<i64: 8, 1>}, {transform_indices = @transform_2, window_bounds = array<i64: 8, 16>}, {transform_indices = @transform_3, window_bounds = array<i64: 8, 128>}]} {
    %c0 = arith.constant 0 : index
    %c0_0 = arith.constant 0 : index
    %0 = vector.load %arg1[%c0, %c0_0] : memref<8x16xf32, #tpu.memory_space<vmem>>, vector<8x16xf32>
    %c0_1 = arith.constant 0 : index
    %c0_2 = arith.constant 0 : index
    %1 = vector.load %arg2[%c0_1, %c0_2] : memref<8x1xi32, #tpu.memory_space<vmem>>, vector<8x1xi32>
    %2 = tpu.iota {dimensions = array<i32: 1>} : vector<8x16xi32>
    %3 = vector.broadcast %1 : vector<8x1xi32> to vector<8x16xi32>
    %4 = arith.cmpi eq, %2, %3 : vector<8x16xi32>
    %c8_i32 = arith.constant 8 : i32
    %5 = arith.muli %arg0, %c8_i32 : i32
    %6 = tpu.iota {dimensions = array<i32: 0>} : vector<8x1xi32>
    %7 = vector.broadcast %5 : i32 to vector<8x1xi32>
    %8 = arith.addi %6, %7 : vector<8x1xi32>
    %c0_i32 = arith.constant 0 : i32
    %9 = vector.broadcast %c0_i32 : i32 to vector<8x1xi32>
    %10 = arith.cmpi eq, %1, %9 : vector<8x1xi32>
    %c8_i32_3 = arith.constant 8 : i32
    %11 = vector.broadcast %c8_i32_3 : i32 to vector<8x1xi32>
    %12 = arith.cmpi sge, %8, %11 : vector<8x1xi32>
    %13 = arith.ori %10, %12 : vector<8x1xi1>
    %c0_i32_4 = arith.constant 0 : i32
    %14 = vector.broadcast %c0_i32_4 : i32 to vector<8x16xi32>
    %15 = arith.cmpi eq, %2, %14 : vector<8x16xi32>
    %16 = vector.broadcast %13 : vector<8x1xi1> to vector<8x16xi1>
    %17 = arith.ori %15, %16 : vector<8x16xi1>
    %cst = arith.constant 0.899999976 : f32
    %cst_5 = arith.constant 0.00714285718 : f32
    %18 = vector.broadcast %cst : f32 to vector<8x16xf32>
    %19 = vector.broadcast %cst_5 : f32 to vector<8x16xf32>
    %20 = arith.select %4, %18, %19 : vector<8x16xi1>, vector<8x16xf32>
    %cst_6 = arith.constant 0.000000e+00 : f32
    %21 = vector.broadcast %cst_6 : f32 to vector<8x16xf32>
    %22 = arith.select %17, %21, %20 : vector<8x16xi1>, vector<8x16xf32>
    %c0_7 = arith.constant 0 : index
    %c0_8 = arith.constant 0 : index
    %23 = vector.load %arg3[%c0_7, %c0_8] : memref<8x16xf32, #tpu.memory_space<vmem>>, vector<8x16xf32>
    tpu.vector_store %arg3[%c0_7, %c0_8], %22 {strides = array<i32>} : memref<8x16xf32, #tpu.memory_space<vmem>>, vector<8x16xf32>,
    %cst_9 = arith.constant -0.0948244631 : f32
    %cst_10 = arith.constant -0.035297446 : f32
    %24 = vector.broadcast %cst_9 : f32 to vector<8x16xf32>
    %25 = vector.broadcast %cst_10 : f32 to vector<8x16xf32>
    %26 = arith.select %4, %24, %25 : vector<8x16xi1>, vector<8x16xf32>
    %27 = arith.mulf %22, %0 : vector<8x16xf32>
    %28 = arith.subf %26, %27 : vector<8x16xf32>
    %cst_11 = arith.constant 0.000000e+00 : f32
    %29 = vector.broadcast %cst_11 : f32 to vector<8x16xf32>
    %30 = arith.select %17, %29, %28 : vector<8x16xi1>, vector<8x16xf32>
    %cst_12 = arith.constant dense<0.000000e+00> : vector<8xf32>
    %31 = vector.multi_reduction <add>, %30, %cst_12 [1] : vector<8x16xf32> to vector<8xf32>
    %32 = vector.shape_cast %31 : vector<8xf32> to vector<8x1xf32>
    %cst_13 = arith.constant dense<0.000000e+00> : vector<1xf32>
    %33 = vector.multi_reduction <add>, %32, %cst_13 [0] : vector<8x1xf32> to vector<1xf32>
    %34 = vector.shape_cast %33 : vector<1xf32> to vector<1x1xf32>
    %35 = vector.shape_cast %34 : vector<1x1xf32> to vector<1x1xf32>
    %36 = vector.broadcast %35 : vector<1x1xf32> to vector<8x128xf32>
    %c0_14 = arith.constant 0 : index
    %c0_15 = arith.constant 0 : index
    %37 = vector.load %arg4[%c0_14, %c0_15] : memref<8x128xf32, #tpu.memory_space<vmem>>, vector<8x128xf32>
    tpu.vector_store %arg4[%c0_14, %c0_15], %36 {strides = array<i32>} : memref<8x128xf32, #tpu.memory_space<vmem>>, vector<8x128xf32>,
    return
  }
  func.func @transform_0(%arg0: i32) -> (i32, i32) {
    %c0_i32 = arith.constant 0 : i32
    %c0_i32_0 = arith.constant 0 : i32
    return %arg0, %c0_i32 : i32, i32
  }
  func.func @transform_1(%arg0: i32) -> (i32, i32) {
    %c0_i32 = arith.constant 0 : i32
    %c0_i32_0 = arith.constant 0 : i32
    return %arg0, %c0_i32 : i32, i32
  }
  func.func @transform_2(%arg0: i32) -> (i32, i32) {
    %c0_i32 = arith.constant 0 : i32
    %c0_i32_0 = arith.constant 0 : i32
    return %arg0, %c0_i32 : i32, i32
  }
  func.func @transform_3(%arg0: i32) -> (i32, i32) {
    %c0_i32 = arith.constant 0 : i32
    %c0_i32_0 = arith.constant 0 : i32
    return %arg0, %c0_i32 : i32, i32
  }
}

</mosaic_0001>

<bundles_post_ra>
// kernel: tpu_custom_call.1
= control target key start
LH: loop header
LB: loop body
LE: loop exit
PB: predicated region body
PF: predicated region fallthrough
CT: control target
= control target key end

     0   :  { %9 = vsyncpa [#allocation3], 0  ;;  %v138_v1 = vmov 0   ;;  %s193_s0 = inlined_call_operand.vmem [shape: f32[8,16], index: 0, kind: input, shape index: {}]   ;;  %s194_s1 = inlined_call_operand.vmem [shape: s32[8,1], index: 1, kind: input, shape index: {}]   ;;  %s195_s2 = inlined_call_operand.hbm [shape: f32[8,16], index: 2, kind: output, shape index: {0}]   ;;  %s196_s3 = inlined_call_operand.hbm [shape: f32[8,128], index: 3, kind: output, shape index: {1}]  }
   0x1   :  { %v16_v0 = vld [vmem:[%s194_s1] sm:$0xff]  ;;  %89 = vset.pattern.permute.xlu0 %v138_v1 }
   0x2   :  { %vm28_vm0 = vcmp.eq.s32.totalorder %v16_v0, 0 }
   0x3   :  { %10 = vsyncpa [#allocation5], 0  ;;  %20 = vperm.xlu0 %89, %v16_v0   ;;  %v32_v2 = vsel %vm28_vm0, 1, %v138_v1  ;;  %v17_v3 = vlaneseq  ;;  %v15_v7 = vld [vmem:[%s193_s0] sm:$0xff]  ;;  %vm40_vm4 = vcmask 130048   ;;  %s141_s1 = smov [#allocation2]  }
   0x4   :  { %v139_v8 = vmov 0.007142857   ;;  %v140_v12 = vmov -0.035297446   ;;  %s62_s16 = sshll.u32 %s141_s1, 4  ;;  %s63_s16 = int_to_ptr.vmem [resolvable:$true] %s62_s16 }
   0x5   :  { %v18_v4 = vand.u32 127, %v17_v3  ;;  %s90_s17 = scalar_lea.vmem %s63_s16, 128  ;;  %p95_p1 = scmp.lt.s32.totalorder %s63_s16, %s63_s16 }
   0x6   :  { %p91_p0 = scmp.ne.s32.totalorder %s63_s16, %s90_s17  ;;  %p96_p2 = scmp.lt.s32.totalorder %s90_s17, %s90_s17 }
   0x7   :  { %34 = vperm.xlu0 %89, %v32_v2   ;;  %vm31_vm2 = vcmp.eq.s32.totalorder %v18_v4, 0 }
   0x8   :  { %p97_p3 = por %p96_p2, %p95_p1 }
   0xa   :  { %p98_p4 = pnand %p97_p3, %p91_p0 }
  0x82   :  { %v21_v5 = vpop.permute.xlu0 %20 }
  0x83   :  { %vm22_vm1 = vcmp.eq.s32.totalorder %v18_v4, %v21_v5 }
  0x84   :  { %v38_v9 = vsel %vm22_vm1, 0.9, %v139_v8  ;;  %v42_v13 = vsel %vm22_vm1, -0.09482446, %v140_v12 }
  0x86   :  { %v35_v6 = vpop.permute.xlu0 %34 }
  0x87   :  { %vm36_vm3 = vcmp.eq.s32.totalorder %v35_v6, 1 }
  0x88   :  { %vm37_vm5 = vmor %vm31_vm2, %vm36_vm3 }
  0x89   :  { %v39_v10 = vsel %vm37_vm5, 0.0, %v38_v9 }
  0x8a   :  { %v43_v11 = vmul.f32 %v39_v10, %v15_v7  ;;  %41 = vst.msk [vmem:[#allocation2] sm:$0xff] %vm40_vm4, %v39_v10 }
  0x8c   :  { %v44_v14 = vsub.f32 %v42_v13, %v43_v11 }
  0x8e   :  { %v45_v15 = vsel %vm37_vm5, 0.0, %v44_v14 }
  0x8f   :  { %v46_v16 = vsel %vm40_vm4, %v45_v15, 0.0 }
  0x90   :  { %47 = vadd.xlane.f32.xlu1 %v46_v16 }
  0x91   :  { %101 = shalt.err (!%p98_p4)
}
  0x92   :  { %s102_s19 = scalar_lea.hbm %s195_s2, 128 }
  0x93   :  { %p103_p5 = scmp.ne.s32.totalorder %s195_s2, %s102_s19  ;;  %p106_p6 = scmp.lt.u32.totalorder %s102_s19, %s195_s2 }
  0x95   :  { %p108_p7 = pnand %p106_p6, %p103_p5 }
  0x97   :  { %111 = shalt.err (!%p108_p7)
}
  0x98   :  { %65 = dma.vmem_to_hbm [thread:$0]  %s63_s16, 128, %s195_s2, [#allocation3]  }
  0x99   :  { %s142_s26 = smov [#allocation4]  }
  0x9a   :  { %s72_s27 = sshll.u32 %s142_s26, 4  ;;  %s73_s27 = int_to_ptr.vmem [resolvable:$true] %s72_s27 }
  0x9b   :  { %s112_s28 = scalar_lea.vmem %s73_s27, 128  ;;  %p117_p9 = scmp.lt.s32.totalorder %s73_s27, %s73_s27 }
  0x9c   :  { %p113_p8 = scmp.ne.s32.totalorder %s73_s27, %s112_s28  ;;  %p118_p10 = scmp.lt.s32.totalorder %s112_s28, %s112_s28 }
  0x9e   :  { %p119_p11 = por %p118_p10, %p117_p9 }
  0xa0   :  { %p120_p12 = pnand %p119_p11, %p113_p8 }
 0x11d   :  { %v48_v17 = vpop.xlane.xlu1 %47 }
 0x11e   :  { %v49_v18 = vrot.slane %v48_v17, 4 }
 0x120   :  { %v50_v19 = vadd.f32 %v49_v18, %v48_v17 }
 0x122   :  { %v51_v20 = vrot.slane %v50_v19, 2 }
 0x124   :  { %v52_v21 = vadd.f32 %v51_v20, %v50_v19 }
 0x126   :  { %v53_v22 = vrot.slane %v52_v21, 1 }
 0x128   :  { %v54_v23 = vadd.f32 %v53_v22, %v52_v21 }
 0x12a   :  { %55 = vst [vmem:[#allocation4] sm:$0xff] %v54_v23 }
 0x12b   :  { %123 = shalt.err (!%p120_p12)
}
 0x12c   :  { %s124_s30 = scalar_lea.hbm %s196_s3, 128 }
 0x12d   :  { %p125_p13 = scmp.ne.s32.totalorder %s196_s3, %s124_s30  ;;  %p128_p0 = scmp.lt.u32.totalorder %s124_s30, %s196_s3 }
 0x12f   :  { %p130_p1 = pnand %p128_p0, %p125_p13 }
 0x131   :  { %133 = shalt.err (!%p130_p1)
}
 0x132   :  { %75 = dma.vmem_to_hbm [thread:$0]  %s73_s27, 128, %s196_s3, [#allocation5]  }
 0x133   :  { %134 = dma.done.wait [#allocation3], 128  }
 0x134   :  { %135 = vsyncadd [#allocation3], 4294967168 }
 0x135   :  { %136 = dma.done.wait [#allocation5], 128  }
 0x136   :  { %137 = vsyncadd [#allocation5], 4294967168 }
 0x137   :  { %82 = vsyncpa [#allocation3], 1 }
 0x138   :  { %83 = vsyncpa [#allocation5], 1 }

</bundles_post_ra>
